<compile_context>
chip_gen: v7x
topology: tpu7x:2x2x1
jax: 0.10.0
libtpu: 0.0.40
codegen_flags: <defaults>
</compile_context>

<pallas_src>
import inspect

import jax
import jax.numpy as jnp
from jax.experimental import pallas as pl
from jax.experimental.pallas import tpu as pltpu


def _round_up(x, m):
    return ((x + m - 1) // m) * m


def _supports_buffered():
    if not hasattr(pl, "Buffered"):
        return False
    try:
        return "pipeline_mode" in inspect.signature(pl.BlockSpec).parameters
    except (TypeError, ValueError):
        return True


_HAS_BUFFERED = _supports_buffered()


def _vmem_capacity_bytes():
    # Physical VMEM: 128 MiB on v5e/v6e, 64 MiB on v7x. Conservative fallback.
    try:
        info = pltpu.get_tpu_info()
        cap = getattr(info, "vmem_capacity_bytes", None)
        if cap:
            return int(cap)
    except Exception:
        pass
    return 64 << 20


def _fused_proj_kernel(x_ref, w_ref, b_ref, key_ref, val_ref):
    # x arrives in its source dtype (typically f32); cast to the weight's compute dtype
    # (bf16) right before the MXU dot. f32 accumulation, f32 bias add.
    x = x_ref[...].astype(w_ref.dtype)
    fused = jnp.dot(x, w_ref[...], preferred_element_type=jnp.float32)
    fused = fused + b_ref[...]
    P = key_ref.shape[-1]
    key_ref[...] = fused[:, :P].astype(key_ref.dtype)
    val_ref[...] = fused[:, P:].astype(val_ref.dtype)


def dual_linear_projection(x2d, w_fused, b_fused, *, tm=None, out_dtype=jnp.float32):
    """x2d: (M, F); w_fused: (F, 2P) compute dtype; b_fused: (1, 2P) f32.

    Returns (key (M, P), value (M, P)) in out_dtype via one fused MXU matmul.
    Traceable under jax.jit (all tiling decisions depend only on static shapes).
    """
    M, F = x2d.shape
    two_p = w_fused.shape[1]
    P = two_p // 2

    if tm is None:
        if M >= 2048:
            tm = 1024  # large tiles amortize the ~0.35 us/step overhead (v6e/v7x)
        else:
            # Keep >= 2 grid steps when possible so both v7x TensorCores get work.
            tm = max(8, _round_up(pl.cdiv(M, 2), 8))
    n_tiles = pl.cdiv(M, tm)

    # VMEM budget: x (2 buffers, source dtype) + resident weight/bias + 2 outputs
    # (2 buffers each), clamped to physical VMEM minus headroom.
    bx = jnp.dtype(x2d.dtype).itemsize
    bw = jnp.dtype(w_fused.dtype).itemsize
    bb = jnp.dtype(b_fused.dtype).itemsize
    bo = jnp.dtype(out_dtype).itemsize
    n_w_buf = 1 if _HAS_BUFFERED else 2
    need = (2 * tm * F * bx + n_w_buf * F * two_p * bw + 2 * two_p * bb
            + 2 * 2 * tm * P * bo)
    cap = _vmem_capacity_bytes()
    vmem_limit = max(int(need * 1.5) + (4 << 20), 16 << 20)
    vmem_limit = min(vmem_limit, cap - (8 << 20))

    w_kwargs = dict(pipeline_mode=pl.Buffered(1)) if _HAS_BUFFERED else {}
    in_specs = [
        pl.BlockSpec((tm, F), lambda i: (i, 0)),                  # x row tile (streamed)
        pl.BlockSpec((F, two_p), lambda i: (0, 0), **w_kwargs),   # fused W (resident)
        pl.BlockSpec((1, two_p), lambda i: (0, 0), **w_kwargs),   # fused bias (resident)
    ]
    out_specs = (
        pl.BlockSpec((tm, P), lambda i: (i, 0)),
        pl.BlockSpec((tm, P), lambda i: (i, 0)),
    )

    # Ragged last tile (M % tm != 0): Pallas masks the partial output block; OOB input
    # rows may be read but never contribute to any kept output row (rows independent).
    return pl.pallas_call(
        _fused_proj_kernel,
        out_shape=(
            jax.ShapeDtypeStruct((M, P), out_dtype),
            jax.ShapeDtypeStruct((M, P), out_dtype),
        ),
        grid=(n_tiles,),
        in_specs=in_specs,
        out_specs=out_specs,
        compiler_params=pltpu.CompilerParams(
            dimension_semantics=("parallel",),  # row axis shards across TCs on v7x
            vmem_limit_bytes=vmem_limit,
        ),
    )(x2d, w_fused, b_fused)


class EncoderStoryPallas:
    """JAX/Pallas port of EncoderStory (key/value projectors; CNN branch skipped)."""

    def __init__(self, in_feature_size, img_feature_size, hidden_size, n_layers,
                 proj_dim, rng_key, compute_dtype=jnp.bfloat16):
        del img_feature_size, hidden_size, n_layers  # unused on the prePicked path
        kk, kv = jax.random.split(rng_key)
        # PyTorch Linear stores W as (out, in); keep the transposed (in, out) layout
        # and pre-fuse the key/value projections into a single (F, 2P) weight.
        wk = jax.random.normal(kk, (in_feature_size, proj_dim), jnp.float32) * 0.02
        wv = jax.random.normal(kv, (in_feature_size, proj_dim), jnp.float32) * 0.02
        self.w_fused = jnp.concatenate([wk, wv], axis=1)          # (F, 2P) f32 master copy
        self.b_fused = jnp.zeros((1, 2 * proj_dim), jnp.float32)  # (1, 2P)
        # Compute-dtype weight cached once (no per-forward recast / extra HBM pass).
        self.w_fused_compute = self.w_fused.astype(compute_dtype)
        self.in_feature_size = in_feature_size
        self.proj_dim = proj_dim
        self.compute_dtype = compute_dtype
        # Build/compile once; async dispatch, no host syncs inside the projection.
        self._project = jax.jit(dual_linear_projection)

    def forward(self, story_images, storyId, prePicked):
        assert prePicked[0], "Pallas port implements the prePicked branch only"
        del storyId  # only used by the np.savez side effect on the non-prePicked path
        local_cnn = story_images                       # (B, S, L, F)
        B, S, L, F = local_cnn.shape
        # Keep x in its source dtype; the bf16 cast happens inside the kernel.
        x2d = local_cnn.reshape(B * S * L, F)
        key, value = self._project(x2d, self.w_fused_compute, self.b_fused)
        key = key.reshape(B, S, L, self.proj_dim)
        value = value.reshape(B, S, L, self.proj_dim)
        return key, value, local_cnn


def _reference(story_images, enc):
    # Same compute: bf16 inputs/weights, f32 MXU accumulation, f32 bias add.
    x = story_images.astype(enc.compute_dtype)
    w = enc.w_fused.astype(enc.compute_dtype)
    fused = jnp.einsum("bslf,fq->bslq", x, w,
                       preferred_element_type=jnp.float32) + enc.b_fused.reshape(-1)
    P = enc.proj_dim
    return fused[..., :P], fused[..., P:]


if __name__ == "__main__":
    # small shapes consistent with the module's (B, story_len, spatial, feat) inputs
    B, S, L = 2, 4, 8
    in_feature_size = 256   # stands in for 2048 ResNet features
    proj_dim = 128

    root = jax.random.PRNGKey(0)
    k_data, k_params = jax.random.split(root)

    story_images = jax.random.normal(k_data, (B, S, L, in_feature_size), jnp.float32)
    storyId = list(range(B))
    prePicked = [True]

    enc = EncoderStoryPallas(
        in_feature_size=in_feature_size,
        img_feature_size=1024,
        hidden_size=32,
        n_layers=1,
        proj_dim=proj_dim,
        rng_key=k_params,
    )

    key, value, local_cnn = enc.forward(story_images, storyId, prePicked)
    jax.block_until_ready((key, value, local_cnn))

    # sanity check against a plain-JAX reference (same bf16 compute, f32 accumulation)
    ref_key, ref_value = _reference(story_images, enc)
    assert key.shape == (B, S, L, proj_dim)
    assert value.shape == (B, S, L, proj_dim)
    assert local_cnn.shape == story_images.shape
    assert jnp.allclose(key, ref_key, atol=1e-2, rtol=1e-2)
    assert jnp.allclose(value, ref_value, atol=1e-2, rtol=1e-2)

    print("KERNEL_OK")
</pallas_src>

<mosaic_0001>
module attributes {stable_mosaic.version = 11 : i64} {
  func.func @_fused_proj_kernel(%arg0: i32, %arg1: memref<32x256xf32, #tpu.memory_space<vmem>>, %arg2: memref<256x256xbf16, #tpu.memory_space<vmem>>, %arg3: memref<1x256xf32, #tpu.memory_space<vmem>>, %arg4: memref<32x128xf32, #tpu.memory_space<vmem>>, %arg5: memref<32x128xf32, #tpu.memory_space<vmem>>) attributes {dimension_semantics = [#tpu.dimension_semantics<parallel>], iteration_bounds = array<i64: 2>, scalar_prefetch = 0 : i64, scratch_operands = 0 : i64, tpu.core_type = #tpu.core_type<tc>, window_params = [{transform_indices = @transform_0, window_bounds = array<i64: 32, 256>}, {pipeline_mode = #tpu.pipeline_mode<synchronous>, transform_indices = @transform_1, window_bounds = array<i64: 256, 256>}, {pipeline_mode = #tpu.pipeline_mode<synchronous>, transform_indices = @transform_2, window_bounds = array<i64: 1, 256>}, {transform_indices = @transform_3, window_bounds = array<i64: 32, 128>}, {transform_indices = @transform_4, window_bounds = array<i64: 32, 128>}]} {
    %c0 = arith.constant 0 : index
    %c0_0 = arith.constant 0 : index
    %0 = vector.load %arg1[%c0, %c0_0] : memref<32x256xf32, #tpu.memory_space<vmem>>, vector<32x256xf32>
    %1 = arith.truncf %0 : vector<32x256xf32> to vector<32x256xbf16>
    %c0_1 = arith.constant 0 : index
    %c0_2 = arith.constant 0 : index
    %2 = vector.load %arg2[%c0_1, %c0_2] : memref<256x256xbf16, #tpu.memory_space<vmem>>, vector<256x256xbf16>
    %cst = arith.constant dense<0.000000e+00> : vector<32x256xf32>
    %3 = tpu.matmul %1, %2, %cst {dimension_numbers = #tpu.dot_dimension_numbers<[1], [0], [0], [1], [0, 0, 1, 1], [], []>} : vector<32x256xbf16>, vector<256x256xbf16>, vector<32x256xf32> -> vector<32x256xf32>
    %c0_3 = arith.constant 0 : index
    %c0_4 = arith.constant 0 : index
    %4 = vector.load %arg3[%c0_3, %c0_4] : memref<1x256xf32, #tpu.memory_space<vmem>>, vector<1x256xf32>
    %5 = vector.broadcast %4 : vector<1x256xf32> to vector<32x256xf32>
    %6 = arith.addf %3, %5 : vector<32x256xf32>
    %7 = vector.extract_strided_slice %6 {offsets = [0, 0], sizes = [32, 128], strides = [1, 1]} : vector<32x256xf32> to vector<32x128xf32>
    %c0_5 = arith.constant 0 : index
    %c0_6 = arith.constant 0 : index
    %8 = vector.load %arg4[%c0_5, %c0_6] : memref<32x128xf32, #tpu.memory_space<vmem>>, vector<32x128xf32>
    tpu.vector_store %arg4[%c0_5, %c0_6], %7 {strides = array<i32>} : memref<32x128xf32, #tpu.memory_space<vmem>>, vector<32x128xf32>,
    %9 = vector.extract_strided_slice %6 {offsets = [0, 128], sizes = [32, 128], strides = [1, 1]} : vector<32x256xf32> to vector<32x128xf32>
    %c0_7 = arith.constant 0 : index
    %c0_8 = arith.constant 0 : index
    %10 = vector.load %arg5[%c0_7, %c0_8] : memref<32x128xf32, #tpu.memory_space<vmem>>, vector<32x128xf32>
    tpu.vector_store %arg5[%c0_7, %c0_8], %9 {strides = array<i32>} : memref<32x128xf32, #tpu.memory_space<vmem>>, vector<32x128xf32>,
    return
  }
  func.func @transform_0(%arg0: i32) -> (i32, i32) {
    %c0_i32 = arith.constant 0 : i32
    %c0_i32_0 = arith.constant 0 : i32
    return %arg0, %c0_i32 : i32, i32
  }
  func.func @transform_1(%arg0: i32) -> (i32, i32) {
    %c0_i32 = arith.constant 0 : i32
    %c0_i32_0 = arith.constant 0 : i32
    %c0_i32_1 = arith.constant 0 : i32
    return %c0_i32, %c0_i32_0 : i32, i32
  }
  func.func @transform_2(%arg0: i32) -> (i32, i32) {
    %c0_i32 = arith.constant 0 : i32
    %c0_i32_0 = arith.constant 0 : i32
    %c0_i32_1 = arith.constant 0 : i32
    return %c0_i32, %c0_i32_0 : i32, i32
  }
  func.func @transform_3(%arg0: i32) -> (i32, i32) {
    %c0_i32 = arith.constant 0 : i32
    %c0_i32_0 = arith.constant 0 : i32
    return %arg0, %c0_i32 : i32, i32
  }
  func.func @transform_4(%arg0: i32) -> (i32, i32) {
    %c0_i32 = arith.constant 0 : i32
    %c0_i32_0 = arith.constant 0 : i32
    return %arg0, %c0_i32 : i32, i32
  }
}

</mosaic_0001>

<bundles_post_ra>
// kernel: dual_linear_projection.1
= control target key start
LH: loop header
LB: loop body
LE: loop exit
PB: predicated region body
PF: predicated region fallthrough
CT: control target
= control target key end

     0   :  { %10 = vsyncpa [#allocation3], 0  ;;  %s1334_s0 = inlined_call_operand.hbm [shape: f32[64,256], index: 0, kind: input, shape index: {}]   ;;  %s1335_s1 = inlined_call_operand.hbm [shape: bf16[256,256], index: 1, kind: input, shape index: {}]   ;;  %s1336_s2 = inlined_call_operand.vmem [shape: f32[1,256], index: 2, kind: input, shape index: {}]   ;;  %s1337_s3 = inlined_call_operand.hbm [shape: f32[64,128], index: 3, kind: output, shape index: {0}]   ;;  %s1338_s4 = inlined_call_operand.hbm [shape: f32[64,128], index: 4, kind: output, shape index: {1}]  }
   0x1   :  { %12 = vsyncpa [#allocation3 + $0x1], 0 }
   0x2   :  { %13 = vsyncpa [#allocation6], 0 }
   0x3   :  { %14 = vsyncpa [#allocation4], 0 }
   0x4   :  { %16 = vsyncpa [#allocation4 + $0x1], 0 }
   0x5   :  { %17 = vsyncpa [#allocation9], 0 }
   0x6   :  { %19 = vsyncpa [#allocation9 + $0x1], 0  ;;  %s1075_s15 = smov 0   ;;  %s1077_s16 = smov 0  }
   0x7   :  { %s1079_s17 = smov 0   ;;  %s1081_s18 = smov 0  }
   0x8 LB: > { %s1096_s19 = sadd.s32 4294967295, %s1038_s18   ;;  %s673_s20 = sadd.s32 4294967294, %s1038_s18   ;;  %s1038_s18 = sphi %s1081_s18, %s1358_s18   ;;  %s1034_s17 = sphi %s1079_s17, %s1357_s17   ;;  %s1030_s16 = sphi %s1077_s16, %s1356_s16   ;;  %s1026_s15 = sphi %s1075_s15, %s1355_s15  }
   0x9   : > { %p45_p0 = scmp.ne.s32.totalorder %s1030_s16, %s1026_s15  ;;  %p1339_p1 = scmp.eq.s32.totalorder %s1096_s19, 0 }
   0xa   : > { %p117_p3 = scmp.eq.s32.totalorder %s673_s20, 1  ;;  %p674_p5 = scmp.ge.s32.totalorder %s1038_s18, 1 }
   0xb   : > { %p1105_p4 = por %p1339_p1, %p45_p0  ;;  %p150_p7 = scmp.lt.s32.totalorder %s1038_s18, 3 }
   0xc   : > { %p1110_p6 = por %p117_p3, %p45_p0  ;;  %s1040_s24 = smov [#allocation5]  }
   0xd   : > { %s1342_s21 = scalar_select %p1105_p4, 1, 0 }
   0xe   : > { %s1343_s22 = scalar_select %p1110_p6, 1, 0 }
   0xf   : > { %p1115_p8 = pnand %p674_p5, %p150_p7  ;;  %s162_s25 = sshll.u32 %s1040_s24, 4  ;;  %s1119_s25 = int_to_ptr.vmem [resolvable:$true] %s162_s25 }
  0x10   : > { %s1131_s27 = sadd.s32 1, %s1038_s18   ;;  %s32_s28 = sadd.s32 1, %s1034_s17 }
  0x11   : > { %s1344_s23 = scalar_select %p1115_p8, 1, 0 }
  0x12   : > { %p772_p9 = pneg %p1115_p8  ;;  %s29_s29 = ssub.s32 %s1038_s18, %s1131_s27 }
  0x13   : > { %s878_s6 = scalar_lea.hbm %s1335_s1, 4096 }
  0x14   : > { %p1126_p11 = pnand %p772_p9, %p1339_p1  ;;  %p879_p12 = scmp.ne.s32.totalorder %s1335_s1, %s878_s6 }
  0x15   : > { %p885_p5 = scmp.lt.u32.totalorder %s878_s6, %s1335_s1 }
  0x16   : > { %p880_p13 = pneg %p1126_p11 }
  0x18   : > { %p881_p0 = pnand %p880_p13, %p879_p12 }
  0x1a   : > { %p882_p3 = pneg %p881_p0 }
  0x1c   : > { %p887_p7 = pnand %p885_p5, %p882_p3 }
  0x1e   : > { %890 = shalt.err (!%p887_p7)
}
  0x1f   : > { %s891_s11 = scalar_lea.vmem %s1119_s25, 4096  ;;  %p899_p2 = scmp.lt.s32.totalorder %s1119_s25, %s1119_s25 }
  0x20   : > { %p892_p9 = scmp.ne.s32.totalorder %s1119_s25, %s891_s11  ;;  %p900_p6 = scmp.lt.s32.totalorder %s891_s11, %s891_s11 }
  0x22   : > { %p894_p10 = pnand %p892_p9, %p880_p13  ;;  %p901_p4 = por %p900_p6, %p899_p2 }
  0x24   : > { %p895_p1 = pneg %p894_p10 }
  0x26   : > { %p902_p8 = pnand %p901_p4, %p895_p1 }
  0x28   : > { %905 = shalt.err (!%p902_p8)
}
  0x29   : > { %s1041_s12 = smov 128   ;;  %s1042_s13 = smov 8  }
  0x2a   : > { %775 = dma.hbm_to_vmem [thread:$0]  (!%p1126_p11), %s1335_s1, 4096, %s1119_s25, [#allocation6], %s1041_s12, %s1041_s12, %s1042_s13  }
  0x2b   : > { %p30_p2 = scmp.eq.s32.totalorder %s29_s29, 0  ;;  %p39_p1 = scmp.ne.s32.totalorder %s1034_s17, %s1030_s16 }
  0x2c   : > { %p40_p4 = scmp.eq.s32.totalorder %s1038_s18, 0  ;;  %p788_p6 = scmp.lt.s32.totalorder %s1038_s18, 2 }
  0x2d   : > { %s1162_s24 = scalar_select %p30_p2, %s1034_s17, %s32_s28  }
  0x2e   : > { %p41_p8 = por %p40_p4, %p39_p1  ;;  %p1346_p10 = scmp.eq.s32.totalorder %s1096_s19, 1 }
  0x2f   : > { %s179_s5 = sand.u32 1, %s1034_s17   ;;  %s727_s6 = sshll.u32 %s1038_s18, 10 }
  0x30   : > { %p1166_p12 = por %p1346_p10, %p39_p1  ;;  %s677_s7 = sshll.u32 %s179_s5, 6 }
  0x31   : > { %s1175_s9 = scalar_lea.hbm %s1334_s0, %s727_s6  ;;  %s183_s25 = scalar_lea.vmem [#allocation2], %s677_s7 }
  0x32   : > { %s191_s28 = sshll.u32 %s183_s25, 4  ;;  %p1177_p11 = pnand %p788_p6, %p41_p8  ;;  %s1181_s28 = int_to_ptr.vmem [resolvable:$true] %s191_s28 }
  0x33   : > { %s1183_s10 = scalar_lea.sflag [#allocation3], %s179_s5  ;;  %s906_s11 = scalar_lea.hbm %s1175_s9, 1024 }
  0x34   : > { %p907_p13 = scmp.ne.s32.totalorder %s1175_s9, %s906_s11  ;;  %p908_p0 = pneg %p1177_p11 }
  0x35   : > { %s911_s14 = scalar_lea.hbm %s1334_s0, 2048  ;;  %p912_p7 = scmp.lt.u32.totalorder %s1175_s9, %s1334_s0 }
  0x36   : > { %p909_p3 = pnand %p908_p0, %p907_p13  ;;  %p913_p9 = scmp.lt.u32.totalorder %s911_s14, %s906_s11 }
  0x37   : > { %p915_p1 = scmp.lt.u32.totalorder %s906_s11, %s1175_s9 }
  0x38   : > { %p910_p5 = pneg %p909_p3  ;;  %p914_p2 = por %p913_p9, %p912_p7 }
  0x3a   : > { %p916_p4 = por %p915_p1, %p914_p2 }
  0x3c   : > { %p917_p6 = pnand %p916_p4, %p910_p5 }
  0x3e   : > { %920 = shalt.err (!%p917_p6)
}
  0x3f   : > { %s921_s5 = scalar_lea.vmem %s1181_s28, 1024  ;;  %s1043_s7 = smov [#allocation2]  }
  0x40   : > { %p922_p8 = scmp.ne.s32.totalorder %s1181_s28, %s921_s5  ;;  %s926_s26 = sshll.u32 %s1043_s7, 4  ;;  %s927_s26 = int_to_ptr.vmem [resolvable:$false] %s926_s26 }
  0x41   : > { %s928_s8 = scalar_lea.vmem %s927_s26, 2048  ;;  %p929_p3 = scmp.lt.s32.totalorder %s1181_s28, %s927_s26 }
  0x42   : > { %p924_p10 = pnand %p922_p8, %p908_p0  ;;  %p930_p7 = scmp.lt.s32.totalorder %s928_s8, %s921_s5 }
  0x44   : > { %p925_p13 = pneg %p924_p10  ;;  %p931_p9 = por %p930_p7, %p929_p3 }
  0x46   : > { %p932_p2 = pnand %p931_p9, %p925_p13 }
  0x48   : > { %935 = shalt.err (!%p932_p2)
}
  0x49   : > { %s1044_s25 = smov 256   ;;  %s1045_s11 = smov 16  }
  0x4a   : > { %779 = dma.hbm_to_vmem [thread:$0]  (!%p1177_p11), %s1175_s9, 1024, %s1181_s28, %s1183_s10, %s1044_s25, %s1044_s25, %s1045_s11  }
  0x4b   : > { %p1349_p0 = scmp.ne.s32.totalorder %s1344_s23, 0 }
  0x4c   : > { %s1214_s12 = sand.u32 (!%p1349_p0), 1, %s1030_s16   ;;  %p1350_p5 = scmp.ne.s32.totalorder (!%p1349_p0), %s1342_s21, 0 }
  0x4d   : > { %203 = sbr.rel (%p1349_p0) target bundleno = 408 (0x198), region = 32  ;;  %s682_s13 = sshll.u32 (!%p1349_p0), %s1214_s12, 6 }
  0x4e   : > { %s206_s14 = scalar_lea.sflag (!%p1349_p0), [#allocation3], %s1214_s12  ;;  %s1218_s20 = scalar_lea.vmem (!%p1349_p0), [#allocation2], %s682_s13 }
  0x54   : > { %1009 = dma.done.wait (%p1350_p5), %s206_s14, 1024  }
  0x55   : > { %1011 = vsyncadd (%p1350_p5), %s206_s14, 4294966272  ;;  %p1351_p11 = scmp.eq.s32.totalorder %s1096_s19, 0 }
  0x57   : > { %1013 = dma.done.wait (%p1351_p11), [#allocation6], 4096   ;;  %p1352_p1 = pmov %p1351_p11 }
  0x58   : > { %v830_v0 = vld [vmem:[#allocation5 + $0x4] ss:$8 sps:$4 sm:$0xff]   ;;  %v832_v1 = vld [vmem:[#allocation5] ss:$8 sps:$4 sm:$0xff]   ;;  %v833_v2 = vld [vmem:[#allocation5 + $0x14] ss:$8 sps:$4 sm:$0xff]   ;;  %v292_v44 = vlaneseq }
  0x59   : > { %1015 = vsyncadd (%p1352_p1), [#allocation6], 4294963200  ;;  %462 = vmatprep.subr.bf16.mxu0 %v830_v0  ;;  %730 = vmatprep.subr.bf16.mxu1 %v830_v0  ;;  %v835_v3 = vld [vmem:[#allocation5 + $0x10] ss:$8 sps:$4 sm:$0xff]   ;;  %v836_v4 = vld [vmem:[#allocation5 + $0x24] ss:$8 sps:$4 sm:$0xff]  }
  0x5a   : > { %463 = vmatpush1.bf16.msra.mxu0 %v832_v1  ;;  %746 = vmatpush1.bf16.msra.mxu1 %v832_v1  ;;  %v838_v5 = vld [vmem:[#allocation5 + $0x20] ss:$8 sps:$4 sm:$0xff]   ;;  %v839_v6 = vld [vmem:[#allocation5 + $0x34] ss:$8 sps:$4 sm:$0xff]   ;;  %v841_v7 = vld [vmem:[#allocation5 + $0x30] ss:$8 sps:$4 sm:$0xff]  }
  0x5b   : > { %464 = vmatprep.subr.bf16.mxu0 %v833_v2  ;;  %731 = vmatprep.subr.bf16.mxu1 %v833_v2  ;;  %v842_v8 = vld [vmem:[#allocation5 + $0x44] ss:$8 sps:$4 sm:$0xff]   ;;  %v844_v9 = vld [vmem:[#allocation5 + $0x40] ss:$8 sps:$4 sm:$0xff]   ;;  %v845_v10 = vld [vmem:[#allocation5 + $0x54] ss:$8 sps:$4 sm:$0xff]  }
  0x5c   : > { %v847_v11 = vld [vmem:[#allocation5 + $0x50] ss:$8 sps:$4 sm:$0xff]   ;;  %v848_v12 = vld [vmem:[#allocation5 + $0x64] ss:$8 sps:$4 sm:$0xff]   ;;  %v850_v18 = vld [vmem:[#allocation5 + $0x60] ss:$8 sps:$4 sm:$0xff]  }
  0x5d   : > { %v247_v13 = vld [vmem:[%s1218_s20 + $0x8] sm:$0xff]  ;;  %v249_v14 = vld [vmem:[%s1218_s20 + $0x18] sm:$0xff]  ;;  %v246_v38 = vld [vmem:[%s1218_s20] sm:$0xff]  ;;  %v293_v45 = vshrl.u32 %v292_v44, 7  ;;  %s684_s21 = sshll.u32 %s1214_s12, 5  ;;  %s728_s5 = sshll.u32 %s1096_s19, 9 }
  0x5e   : > { %465 = vmatpush1.bf16.msra.mxu0 %v835_v3  ;;  %747 = vmatpush1.bf16.msra.mxu1 %v835_v3  ;;  %v255_v15 = vpack.c.bf16 %v249_v14, %v247_v13  ;;  %v251_v16 = vld [vmem:[%s1218_s20 + $0x28] sm:$0xff]  ;;  %v253_v17 = vld [vmem:[%s1218_s20 + $0x38] sm:$0xff]  ;;  %v248_v39 = vld [vmem:[%s1218_s20 + $0x10] sm:$0xff]  ;;  %s1240_s28 = scalar_lea.vmem [#allocation7], %s684_s21  ;;  %s242_s10 = scalar_lea.vmem [#allocation8], %s684_s21 }
  0x5f   : > { %466 = vmatprep.subr.bf16.mxu0 %v836_v4  ;;  %732 = vmatprep.subr.bf16.mxu1 %v836_v4  ;;  %v257_v19 = vpack.c.bf16 %v253_v17, %v251_v16  ;;  %v851_v20 = vld [vmem:[#allocation5 + $0x74] ss:$8 sps:$4 sm:$0xff]   ;;  %v853_v21 = vld [vmem:[#allocation5 + $0x70] ss:$8 sps:$4 sm:$0xff]   ;;  %v854_v22 = vld [vmem:[#allocation5 + $0x84] ss:$8 sps:$4 sm:$0xff]   ;;  %v254_v42 = vpack.c.bf16 %v248_v39, %v246_v38  ;;  %s1251_s19 = scalar_lea.hbm %s1337_s3, %s728_s5  ;;  %s1258_s11 = scalar_lea.hbm %s1338_s4, %s728_s5 }
  0x60   : > { %494 = vmatprep.mubr.bf16.mxu0 %v255_v15  ;;  %v856_v23 = vld [vmem:[#allocation5 + $0x80] ss:$8 sps:$4 sm:$0xff]   ;;  %v857_v24 = vld [vmem:[#allocation5 + $0x94] ss:$8 sps:$4 sm:$0xff]   ;;  %v859_v25 = vld [vmem:[#allocation5 + $0x90] ss:$8 sps:$4 sm:$0xff]  }
  0x61   : > { %504 = vmatprep.mubr.bf16.mxu1 %v257_v19  ;;  %v860_v26 = vld [vmem:[#allocation5 + $0xa4] ss:$8 sps:$4 sm:$0xff]   ;;  %v862_v27 = vld [vmem:[#allocation5 + $0xa0] ss:$8 sps:$4 sm:$0xff]   ;;  %v863_v28 = vld [vmem:[#allocation5 + $0xb4] ss:$8 sps:$4 sm:$0xff]  }
  0x62   : > { %467 = vmatpush1.bf16.msra.mxu0 %v838_v5  ;;  %748 = vmatpush1.bf16.msra.mxu1 %v838_v5  ;;  %v865_v29 = vld [vmem:[#allocation5 + $0xb0] ss:$8 sps:$4 sm:$0xff]   ;;  %v866_v30 = vld [vmem:[#allocation5 + $0xc4] ss:$8 sps:$4 sm:$0xff]   ;;  %v868_v31 = vld [vmem:[#allocation5 + $0xc0] ss:$8 sps:$4 sm:$0xff]  }
  0x63   : > { %468 = vmatprep.subr.bf16.mxu0 %v839_v6  ;;  %733 = vmatprep.subr.bf16.mxu1 %v839_v6  ;;  %v869_v32 = vld [vmem:[#allocation5 + $0xd4] ss:$8 sps:$4 sm:$0xff]   ;;  %v871_v33 = vld [vmem:[#allocation5 + $0xd0] ss:$8 sps:$4 sm:$0xff]   ;;  %v872_v34 = vld [vmem:[#allocation5 + $0xe4] ss:$8 sps:$4 sm:$0xff]  }
  0x64   : > { %v874_v35 = vld [vmem:[#allocation5 + $0xe0] ss:$8 sps:$4 sm:$0xff]   ;;  %v875_v36 = vld [vmem:[#allocation5 + $0xf4] ss:$8 sps:$4 sm:$0xff]   ;;  %v877_v37 = vld [vmem:[#allocation5 + $0xf0] ss:$8 sps:$4 sm:$0xff]  }
  0x65   : > { %v250_v40 = vld [vmem:[%s1218_s20 + $0x20] sm:$0xff]  ;;  %v252_v41 = vld [vmem:[%s1218_s20 + $0x30] sm:$0xff]  ;;  %v294_v46 = vsub.s32 0, %v293_v45  ;;  %v298_v48 = vsub.s32 1, %v293_v45  ;;  %s542_s29 = sshll.u32 %s1240_s28, 4  ;;  %s558_s6 = sshll.u32 %s242_s10, 4  ;;  %s1244_s29 = int_to_ptr.vmem [resolvable:$true] %s542_s29  ;;  %s1246_s6 = int_to_ptr.vmem [resolvable:$true] %s558_s6 }
  0x66   : > { %469 = vmatpush1.bf16.msra.mxu0 %v841_v7  ;;  %749 = vmatpush1.bf16.msra.mxu1 %v841_v7  ;;  %v256_v43 = vpack.c.bf16 %v252_v41, %v250_v40  ;;  %v290_v47 = vld [vmem:[%s1336_s2] sm:$0x3]  ;;  %s524_s13 = scalar_lea.sflag [#allocation4], %s1214_s12  ;;  %s936_s14 = scalar_lea.vmem %s1244_s29, 512 }
  0x67   : > { %470 = vmatprep.subr.bf16.mxu0 %v842_v8  ;;  %734 = vmatprep.subr.bf16.mxu1 %v842_v8  ;;  %v295_v49 = vrot.slane %v290_v47, %v294_v46  ;;  %v299_v50 = vrot.slane %v290_v47, %v298_v48  ;;  %p937_p4 = scmp.ne.s32.totalorder %s1244_s29, %s936_s14  ;;  %s1046_s20 = smov [#allocation7]  }
  0x68   : > { %s940_s21 = sshll.u32 %s1046_s20, 4  ;;  %s941_s21 = int_to_ptr.vmem [resolvable:$false] %s940_s21 }
  0x69   : > { %p938_p6 = pnand %p937_p4, %p1166_p12  ;;  %s942_s23 = scalar_lea.vmem %s941_s21, 1024 }
  0x6a   : > { %471 = vmatpush1.bf16.msra.mxu0 %v844_v9  ;;  %750 = vmatpush1.bf16.msra.mxu1 %v844_v9  ;;  %p943_p10 = scmp.lt.s32.totalorder %s1244_s29, %s941_s21  ;;  %p944_p13 = scmp.lt.s32.totalorder %s942_s23, %s936_s14 }
  0x6b   : > { %472 = vmatprep.subr.bf16.mxu0 %v845_v10  ;;  %735 = vmatprep.subr.bf16.mxu1 %v845_v10  ;;  %p939_p8 = pneg %p938_p6 }
  0x6c   : > { %p945_p3 = por %p944_p13, %p943_p10 }
  0x6e   : > { %473 = vmatpush1.bf16.msra.mxu0 %v847_v11  ;;  %751 = vmatpush1.bf16.msra.mxu1 %v847_v11  ;;  %p946_p7 = pnand %p945_p3, %p939_p8 }
  0x6f   : > { %474 = vmatprep.subr.bf16.mxu0 %v848_v12  ;;  %736 = vmatprep.subr.bf16.mxu1 %v848_v12 }
  0x72   : > { %475 = vmatpush1.bf16.msra.mxu0 %v850_v18  ;;  %752 = vmatpush1.bf16.msra.mxu1 %v850_v18 }
  0x73   : > { %476 = vmatprep.subr.bf16.mxu0 %v851_v20  ;;  %737 = vmatprep.subr.bf16.mxu1 %v851_v20 }
  0x76   : > { %477 = vmatpush1.bf16.msra.mxu0 %v853_v21  ;;  %753 = vmatpush1.bf16.msra.mxu1 %v853_v21 }
  0x77   : > { %478 = vmatprep.subr.bf16.mxu0 %v854_v22  ;;  %738 = vmatprep.subr.bf16.mxu1 %v854_v22 }
  0x7a   : > { %479 = vmatpush1.bf16.msra.mxu0 %v856_v23  ;;  %754 = vmatpush1.bf16.msra.mxu1 %v856_v23 }
  0x7b   : > { %480 = vmatprep.subr.bf16.mxu0 %v857_v24  ;;  %739 = vmatprep.subr.bf16.mxu1 %v857_v24 }
  0x7e   : > { %481 = vmatpush1.bf16.msra.mxu0 %v859_v25  ;;  %755 = vmatpush1.bf16.msra.mxu1 %v859_v25 }
  0x7f   : > { %482 = vmatprep.subr.bf16.mxu0 %v860_v26  ;;  %740 = vmatprep.subr.bf16.mxu1 %v860_v26 }
  0x82   : > { %483 = vmatpush1.bf16.msra.mxu0 %v862_v27  ;;  %756 = vmatpush1.bf16.msra.mxu1 %v862_v27 }
  0x83   : > { %484 = vmatprep.subr.bf16.mxu0 %v863_v28  ;;  %741 = vmatprep.subr.bf16.mxu1 %v863_v28 }
  0x86   : > { %485 = vmatpush1.bf16.msra.mxu0 %v865_v29  ;;  %757 = vmatpush1.bf16.msra.mxu1 %v865_v29 }
  0x87   : > { %486 = vmatprep.subr.bf16.mxu0 %v866_v30  ;;  %742 = vmatprep.subr.bf16.mxu1 %v866_v30 }
  0x8a   : > { %487 = vmatpush1.bf16.msra.mxu0 %v868_v31  ;;  %758 = vmatpush1.bf16.msra.mxu1 %v868_v31 }
  0x8b   : > { %488 = vmatprep.subr.bf16.mxu0 %v869_v32  ;;  %743 = vmatprep.subr.bf16.mxu1 %v869_v32 }
  0x8e   : > { %489 = vmatpush1.bf16.msra.mxu0 %v871_v33  ;;  %759 = vmatpush1.bf16.msra.mxu1 %v871_v33 }
  0x8f   : > { %490 = vmatprep.subr.bf16.mxu0 %v872_v34  ;;  %744 = vmatprep.subr.bf16.mxu1 %v872_v34 }
  0x92   : > { %491 = vmatpush1.bf16.msra.mxu0 %v874_v35  ;;  %760 = vmatpush1.bf16.msra.mxu1 %v874_v35 }
  0x93   : > { %492 = vmatprep.subr.bf16.mxu0 %v875_v36  ;;  %745 = vmatprep.subr.bf16.mxu1 %v875_v36 }
  0x96   : > { %493 = vmatpush1.bf16.msra.mxu0 %v877_v37  ;;  %761 = vmatpush1.bf16.msra.mxu1 %v877_v37 }
  0x99   : > { %495 = vmatmul.mubr.bf16.vlgmr.msra.gmra.mrb[0].mxu0 %v254_v42  ;;  %505 = vmatmul.mubr.bf16.vlgmr.msra.gmra.mrb[0].mxu1 %v256_v43 }
 0x16c   : > { %v496_v51 = vpop.f32.mrb[0].mxu0  ;;  %v506_v52 = vpop.f32.mrb[0].mxu1 }
 0x16d   : > { %v497_v53 = vadd.f32 %v496_v51, %v295_v49  ;;  %v507_v54 = vadd.f32 %v506_v52, %v295_v49  ;;  %v498_v55 = vpop.f32.mrb[1].mxu0  ;;  %v508_v56 = vpop.f32.mrb[1].mxu1 }
 0x16e   : > { %v499_v57 = vadd.f32 %v498_v55, %v299_v50  ;;  %v509_v58 = vadd.f32 %v508_v56, %v299_v50  ;;  %v500_v59 = vpop.f32.mrb[2].mxu0  ;;  %v510_v60 = vpop.f32.mrb[2].mxu1 }
 0x16f   : > { %515 = vst [vmem:[%s1240_s28] sm:$0xff] %v497_v53  ;;  %517 = vst [vmem:[%s1240_s28 + $0x10] sm:$0xff] %v507_v54  ;;  %v501_v61 = vadd.f32 %v500_v59, %v295_v49  ;;  %v511_v62 = vadd.f32 %v510_v60, %v295_v49  ;;  %v502_v63 = vpop.f32.mrb[3].mxu0  ;;  %v512_v0 = vpop.f32.mrb[3].mxu1 }
 0x170   : > { %519 = vst [vmem:[%s242_s10] sm:$0xff] %v499_v57  ;;  %521 = vst [vmem:[%s242_s10 + $0x10] sm:$0xff] %v509_v58  ;;  %v503_v1 = vadd.f32 %v502_v63, %v299_v50  ;;  %v513_v2 = vadd.f32 %v512_v0, %v299_v50 }
 0x171   : > { %516 = vst [vmem:[%s1240_s28 + $0x8] sm:$0xff] %v501_v61  ;;  %518 = vst [vmem:[%s1240_s28 + $0x18] sm:$0xff] %v511_v62 }
 0x172   : > { %520 = vst [vmem:[%s242_s10 + $0x8] sm:$0xff] %v503_v1  ;;  %522 = vst [vmem:[%s242_s10 + $0x18] sm:$0xff] %v513_v2 }
 0x173   : > { %949 = shalt.err (!%p946_p7)
}
 0x174   : > { %s950_s9 = scalar_lea.hbm %s1251_s19, 512  ;;  %s954_s5 = scalar_lea.hbm %s1337_s3, 1024 }
 0x175   : > { %p951_p9 = scmp.ne.s32.totalorder %s1251_s19, %s950_s9  ;;  %p955_p5 = scmp.lt.u32.totalorder %s1251_s19, %s1337_s3 }
 0x176   : > { %p956_p11 = scmp.lt.u32.totalorder %s954_s5, %s950_s9  ;;  %p958_p4 = scmp.lt.u32.totalorder %s950_s9, %s1251_s19 }
 0x177   : > { %p952_p2 = pnand %p951_p9, %p1166_p12 }
 0x178   : > { %p957_p1 = por %p956_p11, %p955_p5 }
 0x179   : > { %p953_p0 = pneg %p952_p2 }
 0x17a   : > { %p959_p6 = por %p958_p4, %p957_p1 }
 0x17c   : > { %p960_p8 = pnand %p959_p6, %p953_p0 }
 0x17e   : > { %963 = shalt.err (!%p960_p8)
}
 0x17f   : > { %s1047_s8 = smov 128   ;;  %s1048_s25 = smov 8  }
 0x180   : > { %768 = dma.vmem_to_hbm [thread:$0]  (%p1166_p12), %s1244_s29, 512, %s1251_s19, %s524_s13, %s1047_s8, %s1047_s8, %s1048_s25  }
 0x181   : > { %s529_s14 = scalar_lea.sflag [#allocation9], %s1214_s12  ;;  %s964_s20 = scalar_lea.vmem %s1246_s6, 512 }
 0x182   : > { %p965_p10 = scmp.ne.s32.totalorder %s1246_s6, %s964_s20  ;;  %s1049_s21 = smov [#allocation8]  }
 0x183   : > { %s968_s23 = sshll.u32 %s1049_s21, 4  ;;  %s969_s23 = int_to_ptr.vmem [resolvable:$false] %s968_s23 }
 0x184   : > { %p966_p13 = pnand %p965_p10, %p1166_p12  ;;  %s970_s9 = scalar_lea.vmem %s969_s23, 1024 }
 0x185   : > { %p971_p7 = scmp.lt.s32.totalorder %s1246_s6, %s969_s23  ;;  %p972_p9 = scmp.lt.s32.totalorder %s970_s9, %s964_s20 }
 0x186   : > { %p967_p3 = pneg %p966_p13 }
 0x187   : > { %p973_p2 = por %p972_p9, %p971_p7 }
 0x189   : > { %p974_p0 = pnand %p973_p2, %p967_p3 }
 0x18b   : > { %977 = shalt.err (!%p974_p0)
}
 0x18c   : > { %s978_s29 = scalar_lea.hbm %s1258_s11, 512  ;;  %s982_s28 = scalar_lea.hbm %s1338_s4, 1024 }
 0x18d   : > { %p979_p5 = scmp.ne.s32.totalorder %s1258_s11, %s978_s29  ;;  %p983_p4 = scmp.lt.u32.totalorder %s1258_s11, %s1338_s4 }
 0x18e   : > { %p984_p6 = scmp.lt.u32.totalorder %s982_s28, %s978_s29  ;;  %p986_p10 = scmp.lt.u32.totalorder %s978_s29, %s1258_s11 }
 0x18f   : > { %p980_p11 = pnand %p979_p5, %p1166_p12 }
 0x190   : > { %p985_p8 = por %p984_p6, %p983_p4 }
 0x191   : > { %p981_p1 = pneg %p980_p11 }
 0x192   : > { %p987_p13 = por %p986_p10, %p985_p8 }
 0x194   : > { %p988_p3 = pnand %p987_p13, %p981_p1 }
 0x196   : > { %991 = shalt.err (!%p988_p3)
}
 0x197   : > { %769 = dma.vmem_to_hbm [thread:$0]  (%p1166_p12), %s1246_s6, 512, %s1258_s11, %s529_s14, %s1047_s8, %s1047_s8, %s1048_s25  }
 0x198 PF: > { %s573_s7 = sand.u32 1, %s1026_s15   ;;  %p1353_p7 = scmp.ne.s32.totalorder %s1343_s22, 0 }
 0x199   : > { %p1354_p9 = scmp.ge.s32.totalorder %s1038_s18, 2  ;;  %s574_s26 = scalar_lea.sflag [#allocation4], %s573_s7 }
 0x19b   : > { %p781_p2 = pnand %p1354_p9, %p1353_p7 }
 0x19d   : > { %1017 = dma.done.wait (!%p781_p2), %s574_s26, 512  }
 0x19e   : > { %1019 = vsyncadd (!%p781_p2), %s574_s26, 4294966784  ;;  %s583_s30 = scalar_lea.sflag [#allocation9], %s573_s7 }
 0x19f   : > { %1021 = dma.done.wait (!%p781_p2), %s583_s30, 512  }
 0x1a0   : > { %1023 = vsyncadd (!%p781_p2), %s583_s30, 4294966784  ;;  %p22_p12 = scmp.ge.s32.totalorder %s1131_s27, 4   ;;  %s1355_s15 = smov %s1030_s16 }
 0x1a1   : > { %s1356_s16 = smov %s1034_s17  ;;  %s1357_s17 = smov %s1162_s24 }
 0x1a2   : > { %s1358_s18 = smov %s1131_s27  ;;  %24 = sbr.rel (!%p22_p12) target bundleno = 8 (0x8), region = 98 }
 0x1a9   :  { %588 = vsyncpa [#allocation3], 1 }
 0x1aa   :  { %590 = vsyncpa [#allocation3 + $0x1], 1 }
 0x1ab   :  { %591 = vsyncpa [#allocation6], 1 }
 0x1ac   :  { %592 = vsyncpa [#allocation4], 1 }
 0x1ad   :  { %594 = vsyncpa [#allocation4 + $0x1], 1 }
 0x1ae   :  { %595 = vsyncpa [#allocation9], 1 }
 0x1af   :  { %597 = vsyncpa [#allocation9 + $0x1], 1 }

</bundles_post_ra>
